<compile_context>
chip_gen: v6e
topology: v6e:2x2x1
jax: 0.10.0
libtpu: 0.0.40
codegen_flags: <defaults>
</compile_context>

<pallas_src>
import functools
import math

import jax
import jax.numpy as jnp
from jax.experimental import pallas as pl
from jax.experimental.pallas import tpu as pltpu


def _round_up(x, m):
    return (x + m - 1) // m * m


def _htriplet_kernel(a_ref, p_ref, n_ref, out_ref, acc_ref, *,
                     margin, c, batch, tb, sub, n_sub):
    ti = pl.program_id(0)

    @pl.when(ti == 0)
    def _init():
        acc_ref[...] = jnp.zeros_like(acc_ref)

    sqrt_c = math.sqrt(c)
    inv_sqrt_c = 1.0 / sqrt_c
    # Static: only if B is not a multiple of tb can any tile contain
    # out-of-bounds (garbage) rows.
    needs_mask = (batch % tb) != 0

    def chunk(r0):
        av = a_ref[pl.ds(r0, sub), :]
        pv = p_ref[pl.ds(r0, sub), :]
        nv = n_ref[pl.ds(r0, sub), :]

        # Anchor row scalars, computed once and shared by both distances.
        # Products in the input dtype (packed bf16 muls when applicable),
        # reductions accumulated in f32.
        aa = jnp.sum(av * av, axis=-1, keepdims=True, dtype=jnp.float32)
        coef_b = 1.0 - c * aa           # coefficient of y in mobius_add(-a, y)
        c2_aa = (c * c) * aa

        def dist(yv):
            yy = jnp.sum(yv * yv, axis=-1, keepdims=True, dtype=jnp.float32)
            uy = -jnp.sum(av * yv, axis=-1, keepdims=True, dtype=jnp.float32)
            coef_a = 1.0 + (2.0 * c) * uy + c * yy        # coefficient of -a
            num_sq = (coef_a * coef_a) * aa \
                + (2.0 * coef_a * coef_b) * uy \
                + (coef_b * coef_b) * yy
            den = jnp.maximum(1.0 + (2.0 * c) * uy + c2_aa * yy, 1e-15)
            t = sqrt_c * jnp.sqrt(jnp.maximum(num_sq, 0.0)) \
                * pl.reciprocal(den, approx=True)
            # t >= 0, only the upper artanh clamp is needed.
            # TODO(synk): geoopt's artanh clamp epsilon is version-dependent
            # (1e-5 .. 1e-15 for f32); 1e-7 matches the validated kernel.
            t = jnp.minimum(t, 1.0 - 1e-7)
            # (2/sqrt(c)) * artanh(t) == (1/sqrt(c)) * (log1p(t) - log1p(-t))
            return inv_sqrt_c * (jnp.log1p(t) - jnp.log1p(-t))

        hinge = jnp.maximum(dist(pv) - dist(nv) + margin, 0.0)   # (sub, 1)

        if needs_mask:
            row = ti * tb + r0 + jax.lax.broadcasted_iota(
                jnp.int32, (sub, 1), 0)
            # Row mask is the ONLY place padded/garbage rows touch the result;
            # it must precede any cross-row operation.
            hinge = jnp.where(row < batch, hinge, 0.0)

        acc_ref[...] += hinge

    if n_sub == 1:
        chunk(0)
    else:
        def body(i, carry):
            chunk(pl.multiple_of(i * sub, sub))
            return carry
        jax.lax.fori_loop(0, n_sub, body, 0, unroll=True)

    @pl.when(ti == pl.num_programs(0) - 1)
    def _finalize():
        total = jnp.sum(acc_ref[...])
        out_ref[...] = jnp.broadcast_to(total, (8, 128)).astype(jnp.float32)


def h_triplet_loss(a, p, n, margin=0.2, c=1.0, block_rows=None):
    """Pallas TPU implementation of HTripletLoss.forward. Returns scalar f32."""
    assert a.shape == p.shape == n.shape and a.ndim == 2
    B, D = a.shape
    itemsize = jnp.dtype(a.dtype).itemsize

    # Batch tile: ~8 MiB of double-buffered input DMA (3 inputs x 2 buffers),
    # within every generation's default scoped-VMEM limit.
    if block_rows is None:
        tb = (8 * 1024 * 1024) // (6 * max(D, 1) * itemsize)
        tb = min(2048, tb)
    else:
        tb = int(block_rows)
    tb = max(8, _round_up(tb, 8))
    tb = min(tb, _round_up(B, 8))

    # Inner compute sub-chunk bounds the (rows, 1) scalar-column vreg pressure.
    SUB = 256
    if tb > SUB:
        tb = (tb // SUB) * SUB
        sub = SUB
    else:
        sub = tb
    n_sub = tb // sub
    num_tiles = (B + tb - 1) // tb

    kernel = functools.partial(
        _htriplet_kernel, margin=float(margin), c=float(c),
        batch=B, tb=tb, sub=sub, n_sub=n_sub)

    in_spec = pl.BlockSpec((tb, D), lambda ti: (ti, 0))

    out = pl.pallas_call(
        kernel,
        out_shape=jax.ShapeDtypeStruct((8, 128), jnp.float32),
        grid_spec=pltpu.PrefetchScalarGridSpec(
            num_scalar_prefetch=0,
            grid=(num_tiles,),
            in_specs=[in_spec, in_spec, in_spec],
            out_specs=pl.BlockSpec((8, 128), lambda ti: (0, 0)),
            scratch_shapes=[pltpu.VMEM((sub, 1), jnp.float32)],
        ),
        compiler_params=pltpu.CompilerParams(
            dimension_semantics=("arbitrary",)),
    )(a, p, n)

    return out[0, 0] / B


def _reference_loss(a, p, n, margin=0.2, c=1.0):
    """Pure-JAX reference of the same geoopt math (sanity check)."""
    def dist(x, y):
        xx = jnp.sum(x * x, -1)
        yy = jnp.sum(y * y, -1)
        uy = -jnp.sum(x * y, -1)
        A = 1.0 + 2.0 * c * uy + c * yy
        Bc = 1.0 - c * xx
        num_sq = A * A * xx + 2.0 * A * Bc * uy + Bc * Bc * yy
        den = jnp.maximum(1.0 + 2.0 * c * uy + c * c * xx * yy, 1e-15)
        t = jnp.minimum(jnp.sqrt(c) * jnp.sqrt(jnp.maximum(num_sq, 0.0)) / den,
                        1.0 - 1e-7)
        return (2.0 / jnp.sqrt(c)) * jnp.arctanh(t)
    d = dist(a, p) - dist(a, n) + margin
    return jnp.mean(jnp.maximum(d, 0.0))


if __name__ == "__main__":
    key = jax.random.PRNGKey(0)

    def make_points(k, b, d):
        raw = jax.random.normal(k, (b, d), dtype=jnp.float32)
        nrm = jnp.linalg.norm(raw, axis=-1, keepdims=True)
        return raw / (2.0 + 2.0 * nrm)   # norms <= ~0.5, inside the unit ball

    def check(b, d, block_rows, k):
        ka, kp, kn = jax.random.split(k, 3)
        a = make_points(ka, b, d)
        p = make_points(kp, b, d)
        n = make_points(kn, b, d)
        loss = h_triplet_loss(a, p, n, margin=0.2, c=1.0,
                              block_rows=block_rows)
        jax.block_until_ready(loss)
        ref = _reference_loss(a, p, n, margin=0.2, c=1.0)
        assert jnp.allclose(loss, ref, atol=5e-3, rtol=5e-3), (b, d, loss, ref)

    keys = jax.random.split(key, 4)
    # 1) single tile, single sub-chunk (B=8, D=32; D not a multiple of 128).
    check(8, 32, None, keys[0])
    # 2) multi-tile grid, no partial tile (B=40, tb=8 -> 5 tiles).
    check(40, 32, 8, keys[1])
    # 3) inner sub-chunk loop + partial last tile + row mask
    #    (B=520, tb=512, sub=256, n_sub=2, 2 tiles).
    check(520, 40, 512, keys[2])
    # 4) B smaller than the 8-row tile floor and not a multiple of 8.
    check(13, 32, None, keys[3])

    print("KERNEL_OK")
</pallas_src>

<mosaic_0001>
module attributes {stable_mosaic.version = 11 : i64} {
  func.func @_htriplet_kernel(%arg0: i32, %arg1: memref<8x32xf32, #tpu.memory_space<vmem>>, %arg2: memref<8x32xf32, #tpu.memory_space<vmem>>, %arg3: memref<8x32xf32, #tpu.memory_space<vmem>>, %arg4: memref<8x128xf32, #tpu.memory_space<vmem>>, %arg5: memref<8x1xf32, #tpu.memory_space<vmem>>) attributes {dimension_semantics = [#tpu.dimension_semantics<arbitrary>], iteration_bounds = array<i64: 1>, scalar_prefetch = 0 : i64, scratch_operands = 1 : i64, tpu.core_type = #tpu.core_type<tc>, window_params = [{transform_indices = @transform_0, window_bounds = array<i64: 8, 32>}, {transform_indices = @transform_1, window_bounds = array<i64: 8, 32>}, {transform_indices = @transform_2, window_bounds = array<i64: 8, 32>}, {pipeline_mode = #tpu.pipeline_mode<synchronous>, transform_indices = @transform_3, window_bounds = array<i64: 8, 128>}]} {
    %c0_i32 = arith.constant 0 : i32
    %0 = arith.cmpi eq, %arg0, %c0_i32 : i32
    %1 = arith.extui %0 : i1 to i32
    %c0_i32_0 = arith.constant 0 : i32
    %2 = arith.cmpi ne, %1, %c0_i32_0 : i32
    scf.if %2 {
      %cst_47 = arith.constant 0.000000e+00 : f32
      %124 = vector.broadcast %cst_47 : f32 to vector<8x1xf32>
      %c0_48 = arith.constant 0 : index
      %c0_49 = arith.constant 0 : index
      %125 = vector.load %arg5[%c0_48, %c0_49] : memref<8x1xf32, #tpu.memory_space<vmem>>, vector<8x1xf32>
      tpu.vector_store %arg5[%c0_48, %c0_49], %124 {strides = array<i32>} : memref<8x1xf32, #tpu.memory_space<vmem>>, vector<8x1xf32>,
    } else {
    }
    %c0 = arith.constant 0 : index
    %c0_1 = arith.constant 0 : index
    %3 = vector.load %arg1[%c0, %c0_1] : memref<8x32xf32, #tpu.memory_space<vmem>>, vector<8x32xf32>
    %c0_2 = arith.constant 0 : index
    %c0_3 = arith.constant 0 : index
    %4 = vector.load %arg2[%c0_2, %c0_3] : memref<8x32xf32, #tpu.memory_space<vmem>>, vector<8x32xf32>
    %c0_4 = arith.constant 0 : index
    %c0_5 = arith.constant 0 : index
    %5 = vector.load %arg3[%c0_4, %c0_5] : memref<8x32xf32, #tpu.memory_space<vmem>>, vector<8x32xf32>
    %6 = arith.mulf %3, %3 : vector<8x32xf32>
    %cst = arith.constant dense<0.000000e+00> : vector<8xf32>
    %7 = vector.multi_reduction <add>, %6, %cst [1] : vector<8x32xf32> to vector<8xf32>
    %8 = vector.shape_cast %7 : vector<8xf32> to vector<8x1xf32>
    %cst_6 = arith.constant 1.000000e+00 : f32
    %9 = vector.broadcast %cst_6 : f32 to vector<8x1xf32>
    %10 = arith.mulf %9, %8 : vector<8x1xf32>
    %cst_7 = arith.constant 1.000000e+00 : f32
    %11 = vector.broadcast %cst_7 : f32 to vector<8x1xf32>
    %12 = arith.subf %11, %10 : vector<8x1xf32>
    %cst_8 = arith.constant 1.000000e+00 : f32
    %13 = vector.broadcast %cst_8 : f32 to vector<8x1xf32>
    %14 = arith.mulf %13, %8 : vector<8x1xf32>
    %15 = arith.mulf %4, %4 : vector<8x32xf32>
    %cst_9 = arith.constant dense<0.000000e+00> : vector<8xf32>
    %16 = vector.multi_reduction <add>, %15, %cst_9 [1] : vector<8x32xf32> to vector<8xf32>
    %17 = vector.shape_cast %16 : vector<8xf32> to vector<8x1xf32>
    %18 = arith.mulf %3, %4 : vector<8x32xf32>
    %cst_10 = arith.constant dense<0.000000e+00> : vector<8xf32>
    %19 = vector.multi_reduction <add>, %18, %cst_10 [1] : vector<8x32xf32> to vector<8xf32>
    %20 = vector.shape_cast %19 : vector<8xf32> to vector<8x1xf32>
    %cst_11 = arith.constant 0.000000e+00 : f32
    %21 = vector.broadcast %cst_11 : f32 to vector<8x1xf32>
    %22 = arith.subf %21, %20 : vector<8x1xf32>
    %cst_12 = arith.constant 2.000000e+00 : f32
    %23 = vector.broadcast %cst_12 : f32 to vector<8x1xf32>
    %24 = arith.mulf %23, %22 : vector<8x1xf32>
    %cst_13 = arith.constant 1.000000e+00 : f32
    %25 = vector.broadcast %cst_13 : f32 to vector<8x1xf32>
    %26 = arith.addf %25, %24 : vector<8x1xf32>
    %cst_14 = arith.constant 1.000000e+00 : f32
    %27 = vector.broadcast %cst_14 : f32 to vector<8x1xf32>
    %28 = arith.mulf %27, %17 : vector<8x1xf32>
    %29 = arith.addf %26, %28 : vector<8x1xf32>
    %30 = arith.mulf %29, %29 : vector<8x1xf32>
    %31 = arith.mulf %30, %8 : vector<8x1xf32>
    %cst_15 = arith.constant 2.000000e+00 : f32
    %32 = vector.broadcast %cst_15 : f32 to vector<8x1xf32>
    %33 = arith.mulf %32, %29 : vector<8x1xf32>
    %34 = arith.mulf %33, %12 : vector<8x1xf32>
    %35 = arith.mulf %34, %22 : vector<8x1xf32>
    %36 = arith.addf %31, %35 : vector<8x1xf32>
    %37 = arith.mulf %12, %12 : vector<8x1xf32>
    %38 = arith.mulf %37, %17 : vector<8x1xf32>
    %39 = arith.addf %36, %38 : vector<8x1xf32>
    %cst_16 = arith.constant 2.000000e+00 : f32
    %40 = vector.broadcast %cst_16 : f32 to vector<8x1xf32>
    %41 = arith.mulf %40, %22 : vector<8x1xf32>
    %cst_17 = arith.constant 1.000000e+00 : f32
    %42 = vector.broadcast %cst_17 : f32 to vector<8x1xf32>
    %43 = arith.addf %42, %41 : vector<8x1xf32>
    %44 = arith.mulf %14, %17 : vector<8x1xf32>
    %45 = arith.addf %43, %44 : vector<8x1xf32>
    %cst_18 = arith.constant 1.000000e-15 : f32
    %46 = vector.broadcast %cst_18 : f32 to vector<8x1xf32>
    %47 = arith.maximumf %45, %46 : vector<8x1xf32>
    %cst_19 = arith.constant 0.000000e+00 : f32
    %48 = vector.broadcast %cst_19 : f32 to vector<8x1xf32>
    %49 = arith.maximumf %39, %48 : vector<8x1xf32>
    %50 = math.sqrt %49 : vector<8x1xf32>
    %cst_20 = arith.constant 1.000000e+00 : f32
    %51 = vector.broadcast %cst_20 : f32 to vector<8x1xf32>
    %52 = arith.mulf %51, %50 : vector<8x1xf32>
    %53 = tpu.reciprocal %47 {approx = true} : vector<8x1xf32> -> vector<8x1xf32>
    %54 = arith.mulf %52, %53 : vector<8x1xf32>
    %cst_21 = arith.constant 0.99999988 : f32
    %55 = vector.broadcast %cst_21 : f32 to vector<8x1xf32>
    %56 = arith.minimumf %54, %55 : vector<8x1xf32>
    %57 = math.log1p %56 : vector<8x1xf32>
    %cst_22 = arith.constant 0.000000e+00 : f32
    %58 = vector.broadcast %cst_22 : f32 to vector<8x1xf32>
    %59 = arith.subf %58, %56 : vector<8x1xf32>
    %60 = math.log1p %59 : vector<8x1xf32>
    %61 = arith.subf %57, %60 : vector<8x1xf32>
    %cst_23 = arith.constant 1.000000e+00 : f32
    %62 = vector.broadcast %cst_23 : f32 to vector<8x1xf32>
    %63 = arith.mulf %62, %61 : vector<8x1xf32>
    %64 = arith.mulf %5, %5 : vector<8x32xf32>
    %cst_24 = arith.constant dense<0.000000e+00> : vector<8xf32>
    %65 = vector.multi_reduction <add>, %64, %cst_24 [1] : vector<8x32xf32> to vector<8xf32>
    %66 = vector.shape_cast %65 : vector<8xf32> to vector<8x1xf32>
    %67 = arith.mulf %3, %5 : vector<8x32xf32>
    %cst_25 = arith.constant dense<0.000000e+00> : vector<8xf32>
    %68 = vector.multi_reduction <add>, %67, %cst_25 [1] : vector<8x32xf32> to vector<8xf32>
    %69 = vector.shape_cast %68 : vector<8xf32> to vector<8x1xf32>
    %cst_26 = arith.constant 0.000000e+00 : f32
    %70 = vector.broadcast %cst_26 : f32 to vector<8x1xf32>
    %71 = arith.subf %70, %69 : vector<8x1xf32>
    %cst_27 = arith.constant 2.000000e+00 : f32
    %72 = vector.broadcast %cst_27 : f32 to vector<8x1xf32>
    %73 = arith.mulf %72, %71 : vector<8x1xf32>
    %cst_28 = arith.constant 1.000000e+00 : f32
    %74 = vector.broadcast %cst_28 : f32 to vector<8x1xf32>
    %75 = arith.addf %74, %73 : vector<8x1xf32>
    %cst_29 = arith.constant 1.000000e+00 : f32
    %76 = vector.broadcast %cst_29 : f32 to vector<8x1xf32>
    %77 = arith.mulf %76, %66 : vector<8x1xf32>
    %78 = arith.addf %75, %77 : vector<8x1xf32>
    %79 = arith.mulf %78, %78 : vector<8x1xf32>
    %80 = arith.mulf %79, %8 : vector<8x1xf32>
    %cst_30 = arith.constant 2.000000e+00 : f32
    %81 = vector.broadcast %cst_30 : f32 to vector<8x1xf32>
    %82 = arith.mulf %81, %78 : vector<8x1xf32>
    %83 = arith.mulf %82, %12 : vector<8x1xf32>
    %84 = arith.mulf %83, %71 : vector<8x1xf32>
    %85 = arith.addf %80, %84 : vector<8x1xf32>
    %86 = arith.mulf %12, %12 : vector<8x1xf32>
    %87 = arith.mulf %86, %66 : vector<8x1xf32>
    %88 = arith.addf %85, %87 : vector<8x1xf32>
    %cst_31 = arith.constant 2.000000e+00 : f32
    %89 = vector.broadcast %cst_31 : f32 to vector<8x1xf32>
    %90 = arith.mulf %89, %71 : vector<8x1xf32>
    %cst_32 = arith.constant 1.000000e+00 : f32
    %91 = vector.broadcast %cst_32 : f32 to vector<8x1xf32>
    %92 = arith.addf %91, %90 : vector<8x1xf32>
    %93 = arith.mulf %14, %66 : vector<8x1xf32>
    %94 = arith.addf %92, %93 : vector<8x1xf32>
    %cst_33 = arith.constant 1.000000e-15 : f32
    %95 = vector.broadcast %cst_33 : f32 to vector<8x1xf32>
    %96 = arith.maximumf %94, %95 : vector<8x1xf32>
    %cst_34 = arith.constant 0.000000e+00 : f32
    %97 = vector.broadcast %cst_34 : f32 to vector<8x1xf32>
    %98 = arith.maximumf %88, %97 : vector<8x1xf32>
    %99 = math.sqrt %98 : vector<8x1xf32>
    %cst_35 = arith.constant 1.000000e+00 : f32
    %100 = vector.broadcast %cst_35 : f32 to vector<8x1xf32>
    %101 = arith.mulf %100, %99 : vector<8x1xf32>
    %102 = tpu.reciprocal %96 {approx = true} : vector<8x1xf32> -> vector<8x1xf32>
    %103 = arith.mulf %101, %102 : vector<8x1xf32>
    %cst_36 = arith.constant 0.99999988 : f32
    %104 = vector.broadcast %cst_36 : f32 to vector<8x1xf32>
    %105 = arith.minimumf %103, %104 : vector<8x1xf32>
    %106 = math.log1p %105 : vector<8x1xf32>
    %cst_37 = arith.constant 0.000000e+00 : f32
    %107 = vector.broadcast %cst_37 : f32 to vector<8x1xf32>
    %108 = arith.subf %107, %105 : vector<8x1xf32>
    %109 = math.log1p %108 : vector<8x1xf32>
    %110 = arith.subf %106, %109 : vector<8x1xf32>
    %cst_38 = arith.constant 1.000000e+00 : f32
    %111 = vector.broadcast %cst_38 : f32 to vector<8x1xf32>
    %112 = arith.mulf %111, %110 : vector<8x1xf32>
    %113 = arith.subf %63, %112 : vector<8x1xf32>
    %cst_39 = arith.constant 2.000000e-01 : f32
    %114 = vector.broadcast %cst_39 : f32 to vector<8x1xf32>
    %115 = arith.addf %113, %114 : vector<8x1xf32>
    %cst_40 = arith.constant 0.000000e+00 : f32
    %116 = vector.broadcast %cst_40 : f32 to vector<8x1xf32>
    %117 = arith.maximumf %115, %116 : vector<8x1xf32>
    %c0_41 = arith.constant 0 : index
    %c0_42 = arith.constant 0 : index
    %118 = vector.load %arg5[%c0_41, %c0_42] : memref<8x1xf32, #tpu.memory_space<vmem>>, vector<8x1xf32>
    %119 = arith.addf %118, %117 : vector<8x1xf32>
    %c0_43 = arith.constant 0 : index
    %c0_44 = arith.constant 0 : index
    %120 = vector.load %arg5[%c0_43, %c0_44] : memref<8x1xf32, #tpu.memory_space<vmem>>, vector<8x1xf32>
    tpu.vector_store %arg5[%c0_43, %c0_44], %119 {strides = array<i32>} : memref<8x1xf32, #tpu.memory_space<vmem>>, vector<8x1xf32>,
    %c0_i32_45 = arith.constant 0 : i32
    %121 = arith.cmpi eq, %arg0, %c0_i32_45 : i32
    %122 = arith.extui %121 : i1 to i32
    %c0_i32_46 = arith.constant 0 : i32
    %123 = arith.cmpi ne, %122, %c0_i32_46 : i32
    scf.if %123 {
      %c0_47 = arith.constant 0 : index
      %c0_48 = arith.constant 0 : index
      %124 = vector.load %arg5[%c0_47, %c0_48] : memref<8x1xf32, #tpu.memory_space<vmem>>, vector<8x1xf32>
      %125 = vector.shape_cast %124 : vector<8x1xf32> to vector<1x8x1xf32>
      %cst_49 = arith.constant dense<0.000000e+00> : vector<1xf32>
      %126 = vector.multi_reduction <add>, %125, %cst_49 [1, 2] : vector<1x8x1xf32> to vector<1xf32>
      %127 = vector.shape_cast %126 : vector<1xf32> to vector<1x1x1xf32>
      %128 = vector.extract %127[0, 0, 0] : f32 from vector<1x1x1xf32>
      %129 = vector.broadcast %128 : f32 to vector<8x128xf32>
      %c0_50 = arith.constant 0 : index
      %c0_51 = arith.constant 0 : index
      %130 = vector.load %arg4[%c0_50, %c0_51] : memref<8x128xf32, #tpu.memory_space<vmem>>, vector<8x128xf32>
      tpu.vector_store %arg4[%c0_50, %c0_51], %129 {strides = array<i32>} : memref<8x128xf32, #tpu.memory_space<vmem>>, vector<8x128xf32>,
    } else {
    }
    return
  }
  func.func @transform_0(%arg0: i32) -> (i32, i32) {
    %c0_i32 = arith.constant 0 : i32
    %c0_i32_0 = arith.constant 0 : i32
    return %arg0, %c0_i32 : i32, i32
  }
  func.func @transform_1(%arg0: i32) -> (i32, i32) {
    %c0_i32 = arith.constant 0 : i32
    %c0_i32_0 = arith.constant 0 : i32
    return %arg0, %c0_i32 : i32, i32
  }
  func.func @transform_2(%arg0: i32) -> (i32, i32) {
    %c0_i32 = arith.constant 0 : i32
    %c0_i32_0 = arith.constant 0 : i32
    return %arg0, %c0_i32 : i32, i32
  }
  func.func @transform_3(%arg0: i32) -> (i32, i32) {
    %c0_i32 = arith.constant 0 : i32
    %c0_i32_0 = arith.constant 0 : i32
    %c0_i32_1 = arith.constant 0 : i32
    return %c0_i32, %c0_i32_0 : i32, i32
  }
}

</mosaic_0001>

<bundles_post_ra>
// kernel: tpu_custom_call.1
= control target key start
LH: loop header
LB: loop body
LE: loop exit
PB: predicated region body
PF: predicated region fallthrough
CT: control target
= control target key end

     0   :  { %8 = vsyncpa [#allocation4], 0  ;;  %s362_s0 = inlined_call_operand.hbm [shape: f32[8,32], index: 0, kind: input, shape index: {}]   ;;  %s363_s1 = inlined_call_operand.hbm [shape: f32[8,32], index: 1, kind: input, shape index: {}]   ;;  %s364_s2 = inlined_call_operand.hbm [shape: f32[8,32], index: 2, kind: input, shape index: {}]   ;;  %s365_s3 = inlined_call_operand.hbm [shape: f32[8,128], index: 3, kind: output, shape index: {}]  }
   0x1   :  { %9 = vsyncpa [#allocation7], 0 }
   0x2   :  { %10 = vsyncpa [#allocation5], 0  ;;  %s322_s12 = smov [#allocation6]   ;;  %s323_s14 = smov [#allocation3]  }
   0x3   :  { %s27_s13 = sshll.u32 %s322_s12, 4  ;;  %s17_s15 = sshll.u32 %s323_s14, 4  ;;  %s28_s13 = int_to_ptr.vmem [resolvable:$true] %s27_s13  ;;  %s18_s15 = int_to_ptr.vmem [resolvable:$true] %s17_s15 }
   0x4   :  { %s244_s16 = scalar_lea.vmem %s28_s13, 128  ;;  %p249_p1 = scmp.lt.s32.totalorder %s28_s13, %s28_s13 }
   0x5   :  { %p245_p0 = scmp.ne.s32.totalorder %s28_s13, %s244_s16  ;;  %p250_p2 = scmp.lt.s32.totalorder %s244_s16, %s244_s16 }
   0x7   :  { %p251_p3 = por %p250_p2, %p249_p1 }
   0x9   :  { %p252_p4 = pnand %p251_p3, %p245_p0 }
   0xb   :  { %255 = shalt.err (!%p252_p4)
}
   0xc   :  { %30 = dma.hbm_to_vmem [thread:$0]  %s363_s1, 128, %s28_s13, [#allocation7]  }
   0xd   :  { %s264_s19 = scalar_lea.vmem %s18_s15, 128  ;;  %p269_p6 = scmp.lt.s32.totalorder %s18_s15, %s18_s15 }
   0xe   :  { %p265_p5 = scmp.ne.s32.totalorder %s18_s15, %s264_s19  ;;  %p270_p7 = scmp.lt.s32.totalorder %s264_s19, %s264_s19 }
  0x10   :  { %p271_p8 = por %p270_p7, %p269_p6 }
  0x12   :  { %p272_p9 = pnand %p271_p8, %p265_p5 }
  0x14   :  { %275 = shalt.err (!%p272_p9)
}
  0x15   :  { %20 = dma.hbm_to_vmem [thread:$0]  %s362_s0, 128, %s18_s15, [#allocation4]  }
  0x16   :  { %s324_s22 = smov [#allocation8]  }
  0x17   :  { %s37_s23 = sshll.u32 %s324_s22, 4  ;;  %s38_s23 = int_to_ptr.vmem [resolvable:$true] %s37_s23 }
  0x18   :  { %s284_s24 = scalar_lea.vmem %s38_s23, 128  ;;  %p289_p11 = scmp.lt.s32.totalorder %s38_s23, %s38_s23 }
  0x19   :  { %p285_p10 = scmp.ne.s32.totalorder %s38_s23, %s284_s24  ;;  %p290_p12 = scmp.lt.s32.totalorder %s284_s24, %s284_s24 }
  0x1b   :  { %p291_p13 = por %p290_p12, %p289_p11 }
  0x1d   :  { %p292_p0 = pnand %p291_p13, %p285_p10 }
  0x1f   :  { %295 = shalt.err (!%p292_p0)
}
  0x20   :  { %40 = dma.hbm_to_vmem [thread:$0]  %s364_s2, 128, %s38_s23, [#allocation7]  }
  0x21   :  { %316 = dma.done.wait [#allocation4], 128  }
  0x22   :  { %317 = vsyncadd [#allocation4], 4294967168 }
  0x23   :  { %318 = dma.done.wait [#allocation7], 256  }
  0x24   :  { %319 = vsyncadd [#allocation7], 4294967040  ;;  %v56_v0 = vld [vmem:[#allocation3] sm:$0xff]  ;;  %v57_v1 = vld [vmem:[#allocation6] sm:$0xff]  ;;  %vm60_vm0 = vcmask 261120   ;;  %vm54_vm1 = vcmask 7168  }
  0x25   :  { %v58_v2 = vld [vmem:[#allocation8] sm:$0xff]  ;;  %v69_v3 = vmul.f32 %v57_v1, %v56_v0  ;;  %v65_v4 = vmul.f32 %v57_v1, %v57_v1  ;;  %v59_v11 = vmul.f32 %v56_v0, %v56_v0  ;;  %v325_v13 = vmov 0.0   ;;  %s326_s0 = smov [#allocation9]  }
  0x26   :  { %v124_v5 = vmul.f32 %v58_v2, %v56_v0  ;;  %v120_v6 = vmul.f32 %v58_v2, %v58_v2  ;;  %55 = vst.msk [vmem:[#allocation2] sm:$0xff] %vm54_vm1, %v325_v13  ;;  %s203_s2 = sshll.u32 %s326_s0, 4  ;;  %s204_s2 = int_to_ptr.vmem [resolvable:$true] %s203_s2 }
  0x27   :  { %v70_v7 = vsel %vm60_vm0, %v69_v3, 0.0  ;;  %v66_v8 = vsel %vm60_vm0, %v65_v4, 0.0  ;;  %v61_v12 = vsel %vm60_vm0, %v59_v11, 0.0  ;;  %s296_s27 = scalar_lea.vmem %s204_s2, 128  ;;  %p301_p2 = scmp.lt.s32.totalorder %s204_s2, %s204_s2 }
  0x28   :  { %71 = vadd.xlane.f32.xlu0 %v70_v7  ;;  %67 = vadd.xlane.f32.xlu1 %v66_v8  ;;  %v125_v9 = vsel %vm60_vm0, %v124_v5, 0.0  ;;  %v121_v10 = vsel %vm60_vm0, %v120_v6, 0.0  ;;  %p297_p1 = scmp.ne.s32.totalorder %s204_s2, %s296_s27  ;;  %p302_p3 = scmp.lt.s32.totalorder %s296_s27, %s296_s27 }
  0x2a   :  { %p303_p4 = por %p302_p3, %p301_p2 }
  0x2c   :  { %126 = vadd.xlane.f32.xlu0 %v125_v9  ;;  %122 = vadd.xlane.f32.xlu1 %v121_v10  ;;  %p304_p5 = pnand %p303_p4, %p297_p1 }
  0x30   :  { %62 = vadd.xlane.f32.xlu0 %v61_v12 }
  0xb1   :  { %v72_v14 = vpop.xlane.xlu0 %71  ;;  %v68_v17 = vpop.xlane.xlu1 %67 }
  0xb2   :  { %v73_v15 = vsub.f32 0.0, %v72_v14 }
  0xb4   :  { %v74_v16 = vmul.f32 2.0, %v73_v15 }
  0xb5   :  { %v127_v18 = vpop.xlane.xlu0 %126  ;;  %v123_v28 = vpop.xlane.xlu1 %122 }
  0xb6   :  { %v75_v19 = vadd.f32 1.0, %v74_v16  ;;  %v128_v20 = vsub.f32 0.0, %v127_v18 }
  0xb8   :  { %v76_v21 = vadd.f32 %v75_v19, %v68_v17  ;;  %v129_v22 = vmul.f32 2.0, %v128_v20 }
  0xb9   :  { %v63_v23 = vpop.xlane.xlu0 %62 }
  0xba   :  { %v77_v24 = vmul.f32 %v76_v21, %v76_v21  ;;  %v79_v25 = vmul.f32 2.0, %v76_v21  ;;  %v130_v26 = vadd.f32 1.0, %v129_v22  ;;  %v64_v27 = vsub.f32 1.0, %v63_v23 }
  0xbb   :  { %v86_v32 = vmul.f32 %v68_v17, %v63_v23  ;;  %v140_v44 = vmul.f32 %v123_v28, %v63_v23 }
  0xbc   :  { %v131_v29 = vadd.f32 %v130_v26, %v123_v28  ;;  %v80_v30 = vmul.f32 %v79_v25, %v64_v27  ;;  %v83_v31 = vmul.f32 %v64_v27, %v64_v27  ;;  %v78_v35 = vmul.f32 %v77_v24, %v63_v23 }
  0xbd   :  { %v87_v41 = vadd.f32 %v86_v32, %v75_v19  ;;  %v141_v50 = vadd.f32 %v140_v44, %v130_v26 }
  0xbe   :  { %v132_v33 = vmul.f32 %v131_v29, %v131_v29  ;;  %v134_v34 = vmul.f32 2.0, %v131_v29  ;;  %v81_v36 = vmul.f32 %v80_v30, %v73_v15  ;;  %v84_v38 = vmul.f32 %v83_v31, %v68_v17 }
  0xbf   :  { %v138_v47 = vmul.f32 %v123_v28, %v83_v31  ;;  %v88_v48 = vmax.f32 %v87_v41, 1e-15  ;;  %v142_v52 = vmax.f32 %v141_v50, 1e-15 }
  0xc0   :  { %v82_v37 = vadd.f32 %v81_v36, %v78_v35  ;;  %v135_v39 = vmul.f32 %v134_v34, %v64_v27  ;;  %v133_v42 = vmul.f32 %v132_v33, %v63_v23 }
  0xc2   :  { %v85_v40 = vadd.f32 %v84_v38, %v82_v37  ;;  %v136_v43 = vmul.f32 %v135_v39, %v128_v20 }
  0xc4   :  { %v89_v45 = vmax.f32 %v85_v40, 0.0  ;;  %v137_v46 = vadd.f32 %v136_v43, %v133_v42  ;;  %v177_v43 = vld [vmem:[#allocation2] sm:$0xff] }
  0xc6   :  { %220 = vrsqrt.f32 %v89_v45  ;;  %v139_v49 = vadd.f32 %v138_v47, %v137_v46  ;;  %vm92_vm2 = vcmp.eq.f32.partialorder %v89_v45, inf  ;;  %v95_v55 = vand.u32 2147483648, %v89_v45 }
  0xc7   :  { %222 = vrcp.f32 %v88_v48  ;;  %vm94_vm3 = vcmp.eq.f32.partialorder %v89_v45, 0.0 }
  0xc8   :  { %v143_v51 = vmax.f32 %v139_v49, 0.0 }
  0xca   :  { %224 = vrsqrt.f32 %v143_v51  ;;  %vm146_vm4 = vcmp.eq.f32.partialorder %v143_v51, inf  ;;  %v149_v63 = vand.u32 2147483648, %v143_v51  ;;  %vm148_vm5 = vcmp.eq.f32.partialorder %v143_v51, 0.0 }
  0xcb   :  { %226 = vrcp.f32 %v142_v52 }
  0xd3   :  { %v221_v53 = vpop.eup %220 }
  0xd4   :  { %v91_v54 = vmul.f32 %v221_v53, %v89_v45  ;;  %v223_v57 = vpop.eup %222 }
  0xd6   :  { %v93_v56 = vsel %vm92_vm2, %v89_v45, %v91_v54 }
  0xd7   :  { %v96_v58 = vsel %vm94_vm3, %v95_v55, %v93_v56  ;;  %v225_v59 = vpop.eup %224 }
  0xd8   :  { %v98_v60 = vmul.f32 %v223_v57, %v96_v58  ;;  %v145_v61 = vmul.f32 %v225_v59, %v143_v51  ;;  %v227_v1 = vpop.eup %226 }
  0xda   :  { %v99_v62 = vmin.f32 %v98_v60, 0.9999999  ;;  %v147_v0 = vsel %vm146_vm4, %v143_v51, %v145_v61 }
  0xdb   :  { %v150_v2 = vsel %vm148_vm5, %v149_v63, %v147_v0 }
  0xdc   :  { %v152_v3 = vmul.f32 %v227_v1, %v150_v2  ;;  %v109_v4 = vsub.f32 0.0, %v99_v62  ;;  %v100_v5 = vadd.f32 1.0, %v99_v62  ;;  %v103_v12 = vmul.f32 -0.5, %v99_v62 }
  0xdd   :  { %v106_v24 = vand.u32 2147483647, %v99_v62 }
  0xde   :  { %v153_v6 = vmin.f32 %v152_v3, 0.9999999  ;;  %v110_v7 = vadd.f32 1.0, %v109_v4  ;;  %v113_v11 = vmul.f32 -0.5, %v109_v4  ;;  %v104_v18 = vadd.f32 1.0, %v103_v12 }
  0xdf   :  { %v116_v19 = vand.u32 2147483647, %v109_v4  ;;  %vm107_vm7 = vcmp.lt.f32.partialorder %v106_v24, 0.0004427343 }
  0xe0   :  { %228 = vlog2.f32 %v110_v7  ;;  %v154_v8 = vadd.f32 1.0, %v153_v6  ;;  %v163_v9 = vsub.f32 0.0, %v153_v6  ;;  %v157_v13 = vmul.f32 -0.5, %v153_v6 }
  0xe1   :  { %230 = vlog2.f32 %v100_v5  ;;  %v114_v16 = vadd.f32 1.0, %v113_v11  ;;  %v160_v25 = vand.u32 2147483647, %v153_v6  ;;  %v105_v31 = vmul.f32 %v104_v18, %v99_v62 }
  0xe2   :  { %232 = vlog2.f32 %v154_v8  ;;  %v164_v10 = vadd.f32 1.0, %v163_v9  ;;  %v167_v14 = vmul.f32 -0.5, %v163_v9  ;;  %v158_v22 = vadd.f32 1.0, %v157_v13 }
  0xe3   :  { %v170_v26 = vand.u32 2147483647, %v163_v9  ;;  %v115_v28 = vmul.f32 %v114_v16, %v109_v4  ;;  %vm117_vm6 = vcmp.lt.f32.partialorder %v116_v19, 0.0004427343  ;;  %vm161_vm8 = vcmp.lt.f32.partialorder %v160_v25, 0.0004427343 }
  0xe4   :  { %234 = vlog2.f32 %v164_v10  ;;  %v168_v23 = vadd.f32 1.0, %v167_v14  ;;  %v159_v33 = vmul.f32 %v158_v22, %v153_v6 }
  0xe5   :  { %vm171_vm9 = vcmp.lt.f32.partialorder %v170_v26, 0.0004427343 }
  0xe6   :  { %v169_v35 = vmul.f32 %v168_v23, %v163_v9 }
  0xed   :  { %v229_v15 = vpop.eup %228 }
  0xee   :  { %v231_v17 = vpop.eup %230  ;;  %v112_v21 = vmul.f32 0.6931472, %v229_v15 }
  0xef   :  { %v233_v20 = vpop.eup %232  ;;  %v102_v27 = vmul.f32 0.6931472, %v231_v17 }
  0xf0   :  { %v156_v29 = vmul.f32 0.6931472, %v233_v20  ;;  %v118_v32 = vsel %vm117_vm6, %v115_v28, %v112_v21 }
  0xf1   :  { %v235_v30 = vpop.eup %234  ;;  %v108_v36 = vsel %vm107_vm7, %v105_v31, %v102_v27 }
  0xf2   :  { %v166_v34 = vmul.f32 0.6931472, %v235_v30  ;;  %v162_v37 = vsel %vm161_vm8, %v159_v33, %v156_v29  ;;  %v119_v39 = vsub.f32 %v108_v36, %v118_v32 }
  0xf4   :  { %v172_v38 = vsel %vm171_vm9, %v169_v35, %v166_v34 }
  0xf5   :  { %v173_v40 = vsub.f32 %v162_v37, %v172_v38 }
  0xf7   :  { %v174_v41 = vsub.f32 %v119_v39, %v173_v40 }
  0xf9   :  { %v175_v42 = vadd.f32 0.2, %v174_v41 }
  0xfb   :  { %v176_v44 = vmax.f32 %v175_v42, 0.0 }
  0xfd   :  { %v178_v45 = vadd.f32 %v177_v43, %v176_v44 }
  0xff   :  { %180 = vst.msk [vmem:[#allocation2] sm:$0xff] %vm54_vm1, %v178_v45 }
 0x106   :  { %v184_v46 = vld [vmem:[#allocation2] sm:$0xff] }
 0x107   :  { %v185_v47 = vsel %vm54_vm1, %v184_v46, 0.0 }
 0x108   :  { %186 = vadd.xlane.f32.xlu1 %v185_v47 }
 0x191   :  { %v187_v48 = vpop.xlane.xlu1 %186 }
 0x192   :  { %v188_v49 = vrot.slane %v187_v48, 4 }
 0x194   :  { %v189_v50 = vadd.f32 %v188_v49, %v187_v48 }
 0x196   :  { %v190_v51 = vrot.slane %v189_v50, 2 }
 0x198   :  { %v191_v52 = vadd.f32 %v190_v51, %v189_v50 }
 0x19a   :  { %v192_v53 = vrot.slane %v191_v52, 1 }
 0x19c   :  { %v193_v54 = vadd.f32 %v192_v53, %v191_v52 }
 0x19e   :  { %213 = vpush %v193_v54 }
 0x1cf   :  { %s214_s26 = spop %213 }
 0x1d0   :  { %v195_v55 = vstv %s214_s26 }
 0x1d1   :  { %196 = vst [vmem:[#allocation9] sm:$0xff] %v195_v55 }
 0x1d2   :  { %307 = shalt.err (!%p304_p5)
}
 0x1d3   :  { %206 = dma.vmem_to_hbm [thread:$0]  %s204_s2, 128, %s365_s3, [#allocation5]  }
 0x1d4   :  { %320 = dma.done.wait [#allocation5], 128  }
 0x1d5   :  { %321 = vsyncadd [#allocation5], 4294967168 }
 0x1d6   :  { %210 = vsyncpa [#allocation4], 1 }
 0x1d7   :  { %211 = vsyncpa [#allocation7], 1 }
 0x1d8   :  { %212 = vsyncpa [#allocation5], 1 }

</bundles_post_ra>
